<compile_context>
chip_gen: v5e
topology: v5e:2x2
jax: 0.10.0
libtpu: 0.0.40
codegen_flags: <defaults>
</compile_context>

<pallas_src>
import jax
import jax.numpy as jnp
from jax.experimental import pallas as pl
from jax.experimental.pallas import tpu as pltpu


def _round_up(x: int, m: int) -> int:
    return ((x + m - 1) // m) * m


def mlp_kernel(x_ref,
               w1_ref, b1_ref,
               w2_ref, b2_ref,
               w3_ref, b3_ref,
               w4_ref, b4_ref,
               o_ref):
    # x_ref: (TILE_B, 8) natural batch-major block straight from HBM.
    # Transpose in-kernel (XLU) to lane-dense (features, batch) so every
    # intermediate activation is lane-dense for the VPU/MXU.
    xt = x_ref[...].T.astype(jnp.bfloat16)                        # (8, TILE_B)

    # net1: Linear(8 -> 16) + ReLU        h1 = relu(W1 @ x + b1)
    h1 = jnp.dot(w1_ref[...], xt, preferred_element_type=jnp.float32) + b1_ref[...]
    h1 = jnp.maximum(h1, 0.0).astype(jnp.bfloat16)

    # net2: Linear(16 -> 32) + ReLU
    h2 = jnp.dot(w2_ref[...], h1, preferred_element_type=jnp.float32) + b2_ref[...]
    h2 = jnp.maximum(h2, 0.0).astype(jnp.bfloat16)

    # net3: Linear(32 -> 64)  (no activation)
    h3 = jnp.dot(w3_ref[...], h2, preferred_element_type=jnp.float32) + b3_ref[...]

    # net4: ReLU then Linear(64 -> 8)
    h4 = jnp.maximum(h3, 0.0).astype(jnp.bfloat16)
    out_t = jnp.dot(w4_ref[...], h4, preferred_element_type=jnp.float32) + b4_ref[...]

    # Back to the caller's natural (TILE_B, 8) layout (XLU transpose again).
    o_ref[...] = out_t.T.astype(o_ref.dtype)


def my_test_module_forward(x, params, *, tile_b=8192):
    """x: (B, 8) float32.
    params: PyTorch-layout weights w{i}: (out, in) f32, biases b{i}: (out, 1) f32."""
    B = x.shape[0]

    # --- batch tiling --------------------------------------------------------
    # Default tile 8192 amortizes the ~0.35 us per-grid-step overhead; cap at
    # 16384 so padded I/O tiles + (64, tile) f32 intermediates fit v7x VMEM.
    tile = min(_round_up(tile_b, 8), 16384)
    if B > tile:
        # Ensure >= 4 grid steps for megacore sharding (v7x) + pipeline overlap.
        n_steps = max(4, pl.cdiv(B, tile))
        tile = _round_up(pl.cdiv(B, n_steps), 8)
    else:
        tile = _round_up(max(B, 8), 8)
    b_pad = _round_up(B, tile)
    grid = (b_pad // tile,)

    # Only pad when the batch doesn't divide the tile (no extra HBM pass otherwise).
    x_in = x if b_pad == B else jnp.pad(x, ((0, b_pad - B), (0, 0)))

    # One-time bf16 cast of the weights (MXU-native on v6e/v7x); biases stay f32.
    w1 = params["w1"].astype(jnp.bfloat16); b1 = params["b1"]
    w2 = params["w2"].astype(jnp.bfloat16); b2 = params["b2"]
    w3 = params["w3"].astype(jnp.bfloat16); b3 = params["b3"]
    w4 = params["w4"].astype(jnp.bfloat16); b4 = params["b4"]

    def batch_map(i):
        return (i, 0)

    def const_map(i):          # weights/biases: same block every step -> no re-DMA
        return (0, 0)

    in_specs = [
        pl.BlockSpec((tile, 8), batch_map),                       # x tile (natural layout)
        pl.BlockSpec(w1.shape, const_map), pl.BlockSpec(b1.shape, const_map),
        pl.BlockSpec(w2.shape, const_map), pl.BlockSpec(b2.shape, const_map),
        pl.BlockSpec(w3.shape, const_map), pl.BlockSpec(b3.shape, const_map),
        pl.BlockSpec(w4.shape, const_map), pl.BlockSpec(b4.shape, const_map),
    ]
    out_spec = pl.BlockSpec((tile, 8), batch_map)                 # natural-layout writeback

    out = pl.pallas_call(
        mlp_kernel,
        out_shape=jax.ShapeDtypeStruct((b_pad, 8), jnp.float32),
        grid=grid,
        in_specs=in_specs,
        out_specs=out_spec,
        compiler_params=pltpu.CompilerParams(
            dimension_semantics=("parallel",),   # shard batch tiles across both v7x TCs
            vmem_limit_bytes=48 * 1024 * 1024,   # fits v7x (64 MiB phys) and v5e/v6e (128 MiB)
        ),
    )(x_in, w1, b1, w2, b2, w3, b3, w4, b4)

    return out if b_pad == B else out[:B]


def init_params(key):
    """Deterministic init mirroring nn.Linear: weight (out, in), bias stored as (out, 1)."""
    dims = [(8, 16), (16, 32), (32, 64), (64, 8)]
    params = {}
    for idx, (fan_in, fan_out) in enumerate(dims, start=1):
        key, kw, kb = jax.random.split(key, 3)
        bound = 1.0 / jnp.sqrt(fan_in)
        params[f"w{idx}"] = jax.random.uniform(
            kw, (fan_out, fan_in), jnp.float32, -bound, bound)
        params[f"b{idx}"] = jax.random.uniform(
            kb, (fan_out, 1), jnp.float32, -bound, bound)
    return params


def reference_forward(x, params):
    """Reference with the same numerics as the kernel: bf16 matmul operands,
    f32 accumulation (matches the MXU-native path used in-kernel)."""
    def lin(h, w, b):
        return jnp.dot(h.astype(jnp.bfloat16), w.astype(jnp.bfloat16).T,
                       preferred_element_type=jnp.float32) + b.T
    h = jnp.maximum(lin(x, params["w1"], params["b1"]), 0.0)
    h = jnp.maximum(lin(h, params["w2"], params["b2"]), 0.0)
    h = lin(h, params["w3"], params["b3"])
    h = jnp.maximum(h, 0.0)
    return lin(h, params["w4"], params["b4"])


if __name__ == "__main__":
    key = jax.random.PRNGKey(0)
    key, kx = jax.random.split(key)
    batch = 8
    x = jax.random.normal(kx, (batch, 8), jnp.float32)
    params = init_params(key)

    out = my_test_module_forward(x, params)
    out = jax.block_until_ready(out)

    ref = reference_forward(x, params)
    assert out.shape == (batch, 8), out.shape
    assert jnp.allclose(out, ref, atol=1e-3, rtol=1e-3), "mismatch vs JAX reference"

    print("KERNEL_OK")
</pallas_src>

<mosaic_0001>
module attributes {stable_mosaic.version = 11 : i64} {
  func.func @mlp_kernel(%arg0: i32, %arg1: memref<8x8xf32, #tpu.memory_space<vmem>>, %arg2: memref<16x8xbf16, #tpu.memory_space<vmem>>, %arg3: memref<16x1xf32, #tpu.memory_space<vmem>>, %arg4: memref<32x16xbf16, #tpu.memory_space<vmem>>, %arg5: memref<32x1xf32, #tpu.memory_space<vmem>>, %arg6: memref<64x32xbf16, #tpu.memory_space<vmem>>, %arg7: memref<64x1xf32, #tpu.memory_space<vmem>>, %arg8: memref<8x64xbf16, #tpu.memory_space<vmem>>, %arg9: memref<8x1xf32, #tpu.memory_space<vmem>>, %arg10: memref<8x8xf32, #tpu.memory_space<vmem>>) attributes {dimension_semantics = [#tpu.dimension_semantics<parallel>], iteration_bounds = array<i64: 1>, scalar_prefetch = 0 : i64, scratch_operands = 0 : i64, tpu.core_type = #tpu.core_type<tc>, window_params = [{transform_indices = @transform_0, window_bounds = array<i64: 8, 8>}, {pipeline_mode = #tpu.pipeline_mode<synchronous>, transform_indices = @transform_1, window_bounds = array<i64: 16, 8>}, {pipeline_mode = #tpu.pipeline_mode<synchronous>, transform_indices = @transform_2, window_bounds = array<i64: 16, 1>}, {pipeline_mode = #tpu.pipeline_mode<synchronous>, transform_indices = @transform_3, window_bounds = array<i64: 32, 16>}, {pipeline_mode = #tpu.pipeline_mode<synchronous>, transform_indices = @transform_4, window_bounds = array<i64: 32, 1>}, {pipeline_mode = #tpu.pipeline_mode<synchronous>, transform_indices = @transform_5, window_bounds = array<i64: 64, 32>}, {pipeline_mode = #tpu.pipeline_mode<synchronous>, transform_indices = @transform_6, window_bounds = array<i64: 64, 1>}, {pipeline_mode = #tpu.pipeline_mode<synchronous>, transform_indices = @transform_7, window_bounds = array<i64: 8, 64>}, {pipeline_mode = #tpu.pipeline_mode<synchronous>, transform_indices = @transform_8, window_bounds = array<i64: 8, 1>}, {transform_indices = @transform_9, window_bounds = array<i64: 8, 8>}]} {
    %c0 = arith.constant 0 : index
    %c0_0 = arith.constant 0 : index
    %0 = vector.load %arg1[%c0, %c0_0] : memref<8x8xf32, #tpu.memory_space<vmem>>, vector<8x8xf32>
    %1 = tpu.transpose %0, [1, 0] : vector<8x8xf32> -> vector<8x8xf32>
    %2 = arith.truncf %1 : vector<8x8xf32> to vector<8x8xbf16>
    %c0_1 = arith.constant 0 : index
    %c0_2 = arith.constant 0 : index
    %3 = vector.load %arg2[%c0_1, %c0_2] : memref<16x8xbf16, #tpu.memory_space<vmem>>, vector<16x8xbf16>
    %cst = arith.constant dense<0.000000e+00> : vector<16x8xf32>
    %4 = tpu.matmul %3, %2, %cst {dimension_numbers = #tpu.dot_dimension_numbers<[1], [0], [0], [1], [0, 0, 1, 1], [], []>} : vector<16x8xbf16>, vector<8x8xbf16>, vector<16x8xf32> -> vector<16x8xf32>
    %c0_3 = arith.constant 0 : index
    %c0_4 = arith.constant 0 : index
    %5 = vector.load %arg3[%c0_3, %c0_4] : memref<16x1xf32, #tpu.memory_space<vmem>>, vector<16x1xf32>
    %6 = vector.broadcast %5 : vector<16x1xf32> to vector<16x8xf32>
    %7 = arith.addf %4, %6 : vector<16x8xf32>
    %cst_5 = arith.constant 0.000000e+00 : f32
    %8 = vector.broadcast %cst_5 : f32 to vector<16x8xf32>
    %9 = arith.maximumf %7, %8 : vector<16x8xf32>
    %10 = arith.truncf %9 : vector<16x8xf32> to vector<16x8xbf16>
    %c0_6 = arith.constant 0 : index
    %c0_7 = arith.constant 0 : index
    %11 = vector.load %arg4[%c0_6, %c0_7] : memref<32x16xbf16, #tpu.memory_space<vmem>>, vector<32x16xbf16>
    %cst_8 = arith.constant dense<0.000000e+00> : vector<32x8xf32>
    %12 = tpu.matmul %11, %10, %cst_8 {dimension_numbers = #tpu.dot_dimension_numbers<[1], [0], [0], [1], [0, 0, 1, 1], [], []>} : vector<32x16xbf16>, vector<16x8xbf16>, vector<32x8xf32> -> vector<32x8xf32>
    %c0_9 = arith.constant 0 : index
    %c0_10 = arith.constant 0 : index
    %13 = vector.load %arg5[%c0_9, %c0_10] : memref<32x1xf32, #tpu.memory_space<vmem>>, vector<32x1xf32>
    %14 = vector.broadcast %13 : vector<32x1xf32> to vector<32x8xf32>
    %15 = arith.addf %12, %14 : vector<32x8xf32>
    %cst_11 = arith.constant 0.000000e+00 : f32
    %16 = vector.broadcast %cst_11 : f32 to vector<32x8xf32>
    %17 = arith.maximumf %15, %16 : vector<32x8xf32>
    %18 = arith.truncf %17 : vector<32x8xf32> to vector<32x8xbf16>
    %c0_12 = arith.constant 0 : index
    %c0_13 = arith.constant 0 : index
    %19 = vector.load %arg6[%c0_12, %c0_13] : memref<64x32xbf16, #tpu.memory_space<vmem>>, vector<64x32xbf16>
    %cst_14 = arith.constant dense<0.000000e+00> : vector<64x8xf32>
    %20 = tpu.matmul %19, %18, %cst_14 {dimension_numbers = #tpu.dot_dimension_numbers<[1], [0], [0], [1], [0, 0, 1, 1], [], []>} : vector<64x32xbf16>, vector<32x8xbf16>, vector<64x8xf32> -> vector<64x8xf32>
    %c0_15 = arith.constant 0 : index
    %c0_16 = arith.constant 0 : index
    %21 = vector.load %arg7[%c0_15, %c0_16] : memref<64x1xf32, #tpu.memory_space<vmem>>, vector<64x1xf32>
    %22 = vector.broadcast %21 : vector<64x1xf32> to vector<64x8xf32>
    %23 = arith.addf %20, %22 : vector<64x8xf32>
    %cst_17 = arith.constant 0.000000e+00 : f32
    %24 = vector.broadcast %cst_17 : f32 to vector<64x8xf32>
    %25 = arith.maximumf %23, %24 : vector<64x8xf32>
    %26 = arith.truncf %25 : vector<64x8xf32> to vector<64x8xbf16>
    %c0_18 = arith.constant 0 : index
    %c0_19 = arith.constant 0 : index
    %27 = vector.load %arg8[%c0_18, %c0_19] : memref<8x64xbf16, #tpu.memory_space<vmem>>, vector<8x64xbf16>
    %cst_20 = arith.constant dense<0.000000e+00> : vector<8x8xf32>
    %28 = tpu.matmul %27, %26, %cst_20 {dimension_numbers = #tpu.dot_dimension_numbers<[1], [0], [0], [1], [0, 0, 1, 1], [], []>} : vector<8x64xbf16>, vector<64x8xbf16>, vector<8x8xf32> -> vector<8x8xf32>
    %c0_21 = arith.constant 0 : index
    %c0_22 = arith.constant 0 : index
    %29 = vector.load %arg9[%c0_21, %c0_22] : memref<8x1xf32, #tpu.memory_space<vmem>>, vector<8x1xf32>
    %30 = vector.broadcast %29 : vector<8x1xf32> to vector<8x8xf32>
    %31 = arith.addf %28, %30 : vector<8x8xf32>
    %32 = tpu.transpose %31, [1, 0] : vector<8x8xf32> -> vector<8x8xf32>
    %c0_23 = arith.constant 0 : index
    %c0_24 = arith.constant 0 : index
    %33 = vector.load %arg10[%c0_23, %c0_24] : memref<8x8xf32, #tpu.memory_space<vmem>>, vector<8x8xf32>
    tpu.vector_store %arg10[%c0_23, %c0_24], %32 {strides = array<i32>} : memref<8x8xf32, #tpu.memory_space<vmem>>, vector<8x8xf32>,
    return
  }
  func.func @transform_0(%arg0: i32) -> (i32, i32) {
    %c0_i32 = arith.constant 0 : i32
    %c0_i32_0 = arith.constant 0 : i32
    return %arg0, %c0_i32 : i32, i32
  }
  func.func @transform_1(%arg0: i32) -> (i32, i32) {
    %c0_i32 = arith.constant 0 : i32
    %c0_i32_0 = arith.constant 0 : i32
    %c0_i32_1 = arith.constant 0 : i32
    return %c0_i32, %c0_i32_0 : i32, i32
  }
  func.func @transform_2(%arg0: i32) -> (i32, i32) {
    %c0_i32 = arith.constant 0 : i32
    %c0_i32_0 = arith.constant 0 : i32
    %c0_i32_1 = arith.constant 0 : i32
    return %c0_i32, %c0_i32_0 : i32, i32
  }
  func.func @transform_3(%arg0: i32) -> (i32, i32) {
    %c0_i32 = arith.constant 0 : i32
    %c0_i32_0 = arith.constant 0 : i32
    %c0_i32_1 = arith.constant 0 : i32
    return %c0_i32, %c0_i32_0 : i32, i32
  }
  func.func @transform_4(%arg0: i32) -> (i32, i32) {
    %c0_i32 = arith.constant 0 : i32
    %c0_i32_0 = arith.constant 0 : i32
    %c0_i32_1 = arith.constant 0 : i32
    return %c0_i32, %c0_i32_0 : i32, i32
  }
  func.func @transform_5(%arg0: i32) -> (i32, i32) {
    %c0_i32 = arith.constant 0 : i32
    %c0_i32_0 = arith.constant 0 : i32
    %c0_i32_1 = arith.constant 0 : i32
    return %c0_i32, %c0_i32_0 : i32, i32
  }
  func.func @transform_6(%arg0: i32) -> (i32, i32) {
    %c0_i32 = arith.constant 0 : i32
    %c0_i32_0 = arith.constant 0 : i32
    %c0_i32_1 = arith.constant 0 : i32
    return %c0_i32, %c0_i32_0 : i32, i32
  }
  func.func @transform_7(%arg0: i32) -> (i32, i32) {
    %c0_i32 = arith.constant 0 : i32
    %c0_i32_0 = arith.constant 0 : i32
    %c0_i32_1 = arith.constant 0 : i32
    return %c0_i32, %c0_i32_0 : i32, i32
  }
  func.func @transform_8(%arg0: i32) -> (i32, i32) {
    %c0_i32 = arith.constant 0 : i32
    %c0_i32_0 = arith.constant 0 : i32
    %c0_i32_1 = arith.constant 0 : i32
    return %c0_i32, %c0_i32_0 : i32, i32
  }
  func.func @transform_9(%arg0: i32) -> (i32, i32) {
    %c0_i32 = arith.constant 0 : i32
    %c0_i32_0 = arith.constant 0 : i32
    return %arg0, %c0_i32 : i32, i32
  }
}

</mosaic_0001>

<bundles_post_ra>
// kernel: tpu_custom_call.1
= control target key start
LH: loop header
LB: loop body
LE: loop exit
PB: predicated region body
PF: predicated region fallthrough
CT: control target
= control target key end

     0   :  { %v462_v2 = vmov 0   ;;  %s591_s0 = inlined_call_operand.vmem [shape: f32[8,8], index: 0, kind: input, shape index: {}]   ;;  %s592_s1 = inlined_call_operand.vmem [shape: bf16[16,8], index: 1, kind: input, shape index: {}]   ;;  %s593_s2 = inlined_call_operand.vmem [shape: f32[16,1], index: 2, kind: input, shape index: {}]   ;;  %s594_s3 = inlined_call_operand.vmem [shape: bf16[32,16], index: 3, kind: input, shape index: {}]   ;;  %s595_s4 = inlined_call_operand.vmem [shape: f32[32,1], index: 4, kind: input, shape index: {}]   ;;  %s596_s5 = inlined_call_operand.vmem [shape: bf16[64,32], index: 5, kind: input, shape index: {}]   ;;  %s597_s6 = inlined_call_operand.vmem [shape: f32[64,1], index: 6, kind: input, shape index: {}]   ;;  %s598_s7 = inlined_call_operand.vmem [shape: bf16[8,64], index: 7, kind: input, shape index: {}]   ;;  %s599_s8 = inlined_call_operand.vmem [shape: f32[8,1], index: 8, kind: input, shape index: {}]   ;;  %s600_s9 = inlined_call_operand.hbm [shape: f32[8,8], index: 9, kind: output, shape index: {}]  }
   0x1   :  { %v34_v0 = vld [vmem:[%s591_s0] sm:$0xff]  ;;  %v71_v1 = vld [vmem:[%s593_s2 + $0x8] sm:$0xff]  ;;  %434 = vset.pattern.permute.xlu1 %v462_v2 }
   0x2   :  { %35 = vxpose.xlu0.b32.start.end [1/1] (short) (narrow) %v34_v0, 8 }
   0x3   :  { %14 = vsyncpa [#allocation3], 0  ;;  %79 = vperm.xlu1 %434, %v71_v1   ;;  %435 = vset.pattern.permute.xlu2 %v462_v2  ;;  %v118_v3 = vld [vmem:[%s595_s4 + $0x10] sm:$0xff]  ;;  %v117_v4 = vld [vmem:[%s595_s4 + $0x8] sm:$0xff]  ;;  %vm91_vm0 = vcmask 1043456   ;;  %vm87_vm1 = vcmask 64512  }
   0x4   :  { %v197_v5 = vld [vmem:[%s597_s6 + $0x38] sm:$0xff]  ;;  %v70_v6 = vld [vmem:[%s593_s2] sm:$0xff]  ;;  %v195_v7 = vld [vmem:[%s597_s6 + $0x28] sm:$0xff]  ;;  %vm150_vm2 = vcmask 130048   ;;  %vm258_vm3 = vcmask 261120   ;;  %vm319_vm4 = vcmask 523264  }
   0x5   :  { %v193_v8 = vld [vmem:[%s597_s6 + $0x18] sm:$0xff]  ;;  %v191_v9 = vld [vmem:[%s597_s6 + $0x8] sm:$0xff]  ;;  %v421_v13 = vld [vmem:[%s592_s1] sm:$0xff]  ;;  %s463_s26 = smov [#allocation2]   ;;  %s376_s30 = sshll.u32 %s600_s9, 4  ;;  %s377_s30 = int_to_ptr.hbm [resolvable:$true] %s376_s30 }
   0x6   :  { %v119_v14 = vld [vmem:[%s595_s4 + $0x18] sm:$0xff]  ;;  %v116_v15 = vld [vmem:[%s595_s4] sm:$0xff]  ;;  %v196_v17 = vld [vmem:[%s597_s6 + $0x30] sm:$0xff]  ;;  %s374_s27 = sshll.u32 %s463_s26, 4  ;;  %s375_s27 = int_to_ptr.vmem [resolvable:$true] %s374_s27 }
   0x7   :  { %137 = vperm.xlu2 %435, %v119_v14   ;;  %v194_v22 = vld [vmem:[%s597_s6 + $0x20] sm:$0xff]  ;;  %v192_v28 = vld [vmem:[%s597_s6 + $0x10] sm:$0xff]  ;;  %v423_v30 = vld [vmem:[%s594_s3 + $0x8] sm:$0xff] }
   0x8   :  { %v422_v27 = vld [vmem:[%s594_s3] sm:$0xff]  ;;  %v426_v51 = vld [vmem:[%s596_s5 + $0x10] sm:$0xff]  ;;  %v425_v52 = vld [vmem:[%s596_s5 + $0x8] sm:$0xff] }
   0x9   :  { %v190_v29 = vld [vmem:[%s597_s6] sm:$0xff]  ;;  %v427_v53 = vld [vmem:[%s596_s5 + $0x18] sm:$0xff] }
   0xa   :  { %v313_v31 = vld [vmem:[%s599_s8] sm:$0xff] }
   0xb   :  { %132 = vperm.xlu1 %434, %v118_v3   ;;  %v424_v50 = vld [vmem:[%s596_s5] sm:$0xff] }
   0xf   :  { %122 = vperm.xlu2 %435, %v116_v15  }
  0x13   :  { %127 = vperm.xlu1 %434, %v117_v4  }
  0x17   :  { %230 = vperm.xlu2 %435, %v196_v17  }
  0x1b   :  { %235 = vperm.xlu1 %434, %v197_v5  }
  0x1f   :  { %220 = vperm.xlu2 %435, %v194_v22  }
  0x23   :  { %225 = vperm.xlu1 %434, %v195_v7  }
  0x27   :  { %210 = vperm.xlu2 %435, %v192_v28  }
  0x2b   :  { %215 = vperm.xlu1 %434, %v193_v8  }
  0x2f   :  { %200 = vperm.xlu2 %435, %v190_v29  }
  0x33   :  { %205 = vperm.xlu1 %434, %v191_v9  }
  0x37   :  { %316 = vperm.xlu2 %435, %v313_v31  }
  0x61   :  { %v138_v35 = vpop.permute.xlu2 %137 }
  0x69   :  { %433 = vset.pattern.permute.xlu0 %v462_v2  ;;  %v123_v42 = vpop.permute.xlu2 %122 }
  0x70   :  { %74 = vperm.xlu0 %433, %v70_v6  }
  0x71   :  { %v231_v57 = vpop.permute.xlu2 %230 }
  0x75   :  { %v80_v20 = vpop.permute.xlu1 %79 }
  0x79   :  { %v221_v61 = vpop.permute.xlu2 %220 }
  0x7d   :  { %v133_v34 = vpop.permute.xlu1 %132 }
  0x81   :  { %v211_v2 = vpop.permute.xlu2 %210 }
  0x85   :  { %v128_v38 = vpop.permute.xlu1 %127 }
  0x8d   :  { %v236_v56 = vpop.permute.xlu1 %235 }
  0x95   :  { %v226_v60 = vpop.permute.xlu1 %225 }
  0x9d   :  { %v216_v0 = vpop.permute.xlu1 %215 }
  0xa5   :  { %v206_v15 = vpop.permute.xlu1 %205 }
  0xa6   :  { %v51_v10 = vpop.trf.xlu0 }
  0xa7   :  { %v67_v11 = vpack.c.bf16 %v51_v10, %v51_v10 }
  0xa9   :  { %v93_v12 = vsel %vm91_vm0, %v67_v11, 0 }
  0xaa   :  { %102 = vmatpush.bf16.msra.mxu3 %v93_v12 }
  0xad   :  { %389 = vmatmul.msk.bf16.vlgmr.msra.gmra.mxu3 %vm87_vm1, %v421_v13 }
  0xe2   :  { %v75_v18 = vpop.permute.xlu0 %74 }
 0x130   :  { %v104_v16 = vpop.f32.mrf.mxu3 }
 0x131   :  { %v105_v19 = vadd.f32 %v104_v16, %v75_v18 }
 0x133   :  { %v109_v24 = vmax.f32 %v105_v19, 0.0  ;;  %v201_v19 = vpop.permute.xlu2 %200 }
 0x138   :  { %v106_v21 = vpop.f32.mrf.mxu3 }
 0x139   :  { %v107_v23 = vadd.f32 %v106_v21, %v80_v20 }
 0x13b   :  { %v110_v25 = vmax.f32 %v107_v23, 0.0 }
 0x13d   :  { %v111_v26 = vpack.c.bf16 %v110_v25, %v109_v24 }
 0x13f   :  { %164 = vmatpush.bf16.msra.mxu1 %v111_v26  ;;  %v312_v26 = vld [vmem:[%s598_s7] sm:$0xf] }
 0x142   :  { %398 = vmatmul.msk.bf16.vlgmr.msra.gmra.mxu1 %vm150_vm2, %v422_v27  ;;  %v317_v27 = vpop.permute.xlu2 %316 }
 0x152   :  { %399 = vmatmul.msk.bf16.gmra.mxu1 %vm150_vm2, %v423_v30 }
 0x1bf   :  { %v166_v32 = vpop.f32.mrf.mxu1 }
 0x1c0   :  { %v167_v43 = vadd.f32 %v166_v32, %v123_v42 }
 0x1c2   :  { %v176_v48 = vmax.f32 %v167_v43, 0.0 }
 0x1c7   :  { %v168_v33 = vpop.f32.mrf.mxu1 }
 0x1c8   :  { %v169_v40 = vadd.f32 %v168_v33, %v128_v38 }
 0x1ca   :  { %v177_v46 = vmax.f32 %v169_v40, 0.0 }
 0x1cc   :  { %v180_v49 = vpack.c.bf16 %v177_v46, %v176_v48 }
 0x1cf   :  { %v171_v36 = vpop.f32.mrf.mxu1 }
 0x1d0   :  { %v172_v37 = vadd.f32 %v171_v36, %v133_v34 }
 0x1d2   :  { %v178_v44 = vmax.f32 %v172_v37, 0.0 }
 0x1d7   :  { %v173_v39 = vpop.f32.mrf.mxu1 }
 0x1d8   :  { %v174_v41 = vadd.f32 %v173_v39, %v138_v35 }
 0x1da   :  { %v179_v45 = vmax.f32 %v174_v41, 0.0 }
 0x1dc   :  { %v181_v47 = vpack.c.bf16 %v179_v45, %v178_v44 }
 0x1de   :  { %277 = vmatpush.bf16.msra.mxu0 %v181_v47  ;;  %428 = vmatpush.bf16.msra.mxu2 %v181_v47 }
 0x1e2   :  { %278 = vmatpush.bf16.msra.mxu0 %v180_v49  ;;  %429 = vmatpush.bf16.msra.mxu2 %v180_v49 }
 0x1e5   :  { %416 = vmatmul.msk.bf16.vlgmr.msra.gmra.mxu0 %vm258_vm3, %v424_v50  ;;  %418 = vmatmul.msk.bf16.vlgmr.msra.gmra.mxu2 %vm258_vm3, %v426_v51 }
 0x1f5   :  { %417 = vmatmul.msk.bf16.gmra.mxu0 %vm258_vm3, %v425_v52  ;;  %419 = vmatmul.msk.bf16.gmra.mxu2 %vm258_vm3, %v427_v53 }
 0x262   :  { %v280_v54 = vpop.f32.mrf.mxu0 }
 0x263   :  { %v281_v20 = vadd.f32 %v280_v54, %v201_v19 }
 0x265   :  { %v300_v24 = vmax.f32 %v281_v20, 0.0 }
 0x268   :  { %v290_v55 = vpop.f32.mrf.mxu2 }
 0x269   :  { %v291_v7 = vadd.f32 %v290_v55, %v221_v61 }
 0x26a   :  { %v282_v58 = vpop.f32.mrf.mxu0 }
 0x26b   :  { %v304_v13 = vmax.f32 %v291_v7, 0.0  ;;  %v283_v16 = vadd.f32 %v282_v58, %v206_v15 }
 0x26d   :  { %v301_v22 = vmax.f32 %v283_v16, 0.0 }
 0x26f   :  { %v308_v25 = vpack.c.bf16 %v301_v22, %v300_v24 }
 0x270   :  { %v292_v59 = vpop.f32.mrf.mxu2 }
 0x271   :  { %v293_v4 = vadd.f32 %v292_v59, %v226_v60 }
 0x272   :  { %v285_v62 = vpop.f32.mrf.mxu0 }
 0x273   :  { %v305_v10 = vmax.f32 %v293_v4, 0.0  ;;  %v286_v14 = vadd.f32 %v285_v62, %v211_v2 }
 0x275   :  { %v310_v18 = vpack.c.bf16 %v305_v10, %v304_v13  ;;  %v302_v21 = vmax.f32 %v286_v14, 0.0 }
 0x278   :  { %v295_v63 = vpop.f32.mrf.mxu2 }
 0x279   :  { %v296_v1 = vadd.f32 %v295_v63, %v231_v57 }
 0x27a   :  { %v287_v6 = vpop.f32.mrf.mxu0 }
 0x27b   :  { %v306_v8 = vmax.f32 %v296_v1, 0.0  ;;  %v288_v11 = vadd.f32 %v287_v6, %v216_v0 }
 0x27d   :  { %v303_v17 = vmax.f32 %v288_v11, 0.0 }
 0x27f   :  { %v309_v23 = vpack.c.bf16 %v303_v17, %v302_v21 }
 0x280   :  { %v297_v3 = vpop.f32.mrf.mxu2 }
 0x281   :  { %v298_v5 = vadd.f32 %v297_v3, %v236_v56 }
 0x283   :  { %v307_v9 = vmax.f32 %v298_v5, 0.0 }
 0x285   :  { %v311_v12 = vpack.c.bf16 %v307_v9, %v306_v8 }
 0x287   :  { %327 = vmatpush.bf16.msrb.mxu3 %v311_v12 }
 0x28b   :  { %328 = vmatpush.bf16.msrb.mxu3 %v310_v18 }
 0x28f   :  { %329 = vmatpush.bf16.msrb.mxu3 %v309_v23 }
 0x293   :  { %330 = vmatpush.bf16.msrb.mxu3 %v308_v25 }
 0x296   :  { %420 = vmatmul.msk.bf16.vlgmr.msrb.gmra.mxu3 %vm319_vm4, %v312_v26 }
 0x319   :  { %v332_v28 = vpop.f32.mrf.mxu3 }
 0x31a   :  { %v333_v29 = vadd.f32 %v332_v28, %v317_v27 }
 0x31c   :  { %336 = vxpose.xlu1.b32.start.end [1/1] (short) (narrow) %v333_v29, 8 }
 0x321   :  { %v334_v30 = vpop.f32.mrf.mxu3 }
 0x3c0   :  { %v352_v31 = vpop.trf.xlu1 }
 0x3c1   :  { %368 = vst.msk [vmem:[#allocation2] sm:$0xff] %vm87_vm1, %v352_v31 }
 0x3c2   :  { %379 = dma.vmem_to_hbm [thread:$0]  %s375_s27, 128, %s377_s30, [#allocation3]  }
 0x3c3   :  { %460 = dma.done.wait [#allocation3], 128  }
 0x3c4   :  { %461 = vsyncadd [#allocation3], 4294967168 }
 0x3c5   :  { %384 = vsyncpa [#allocation3], 1 }

</bundles_post_ra>
